<compile_context>
chip_gen: v7x
topology: tpu7x:2x2x1
jax: 0.10.0
libtpu: 0.0.40
codegen_flags: <defaults>
</compile_context>

<pallas_src>
import functools

import jax
import jax.numpy as jnp
from jax.experimental import pallas as pl
from jax.experimental.pallas import tpu as pltpu

_LANES = 128
_SUBLANES = 8
_MAX_TILE_ROWS = 256  # (256,128) f32 = 128 KiB/input; x2 inputs x2 buffers = 512 KiB VMEM


def _ceil_div(a: int, b: int) -> int:
    return -(-a // b)


def _bce_pair_kernel(real_ref, fake_ref, out_ref, acc_ref, *, scale_real, scale_fake):
    """Accumulate sum(clamped log) for both BCE terms over row tiles."""
    pid = pl.program_id(0)

    @pl.when(pid == 0)
    def _init():
        acc_ref[0] = jnp.float32(0.0)
        acc_ref[1] = jnp.float32(0.0)

    # Cast in-kernel (inputs may arrive as bf16); log math in f32 on all chips.
    p_real = real_ref[...].astype(jnp.float32)
    p_fake = fake_ref[...].astype(jnp.float32)

    # PyTorch BCELoss clamps the log term at -100 (log(0) = -inf -> -100).
    log_real = jnp.maximum(jnp.log(p_real), -100.0)        # target = 1
    log_fake = jnp.maximum(jnp.log(1.0 - p_fake), -100.0)  # target = 0

    acc_ref[0] += jnp.sum(log_real)
    acc_ref[1] += jnp.sum(log_fake)

    @pl.when(pid == pl.num_programs(0) - 1)
    def _finalize():
        # loss = 0.5*(err_real + err_fake),  err_* = -sum(log_*)/N_*
        # scale_* = 0.5 / N_* (trace-time constants).
        out_ref[0] = -(acc_ref[0] * scale_real + acc_ref[1] * scale_fake)


def _pack_lane_dense(pred: jax.Array, pad_value: float, rows: int) -> jax.Array:
    """Flatten and pad to a lane-dense (rows, 128) slab (padding contributes 0)."""
    flat = pred.reshape(-1)
    total = rows * _LANES
    flat = jnp.pad(flat, (0, total - flat.shape[0]), constant_values=pad_value)
    return flat.reshape(rows, _LANES)


def discriminator_loss(pred_real: jax.Array, pred_fake: jax.Array) -> jax.Array:
    """Pallas implementation of GANomaly DiscriminatorLoss.forward."""
    n_real = int(pred_real.size)
    n_fake = int(pred_fake.size)

    # Common lane-dense row count for both inputs, aligned to 8 sublanes and to
    # the tile size so the BlockSpec divides evenly.
    rows_needed = max(_ceil_div(n_real, _LANES), _ceil_div(n_fake, _LANES), 1)
    rows_aligned = _ceil_div(rows_needed, _SUBLANES) * _SUBLANES
    tile_rows = min(_MAX_TILE_ROWS, rows_aligned)
    rows = _ceil_div(rows_aligned, tile_rows) * tile_rows
    num_tiles = rows // tile_rows

    # Pad values chosen so the clamped log term of the padding is exactly 0.
    real2d = _pack_lane_dense(pred_real, 1.0, rows)  # log(1)     = 0
    fake2d = _pack_lane_dense(pred_fake, 0.0, rows)  # log(1 - 0) = 0

    kernel = functools.partial(
        _bce_pair_kernel,
        scale_real=0.5 / n_real,
        scale_fake=0.5 / n_fake,
    )

    in_bytes = (real2d.size * real2d.dtype.itemsize
                + fake2d.size * fake2d.dtype.itemsize)
    cost = pl.CostEstimate(
        flops=6 * rows * _LANES,
        transcendentals=2 * rows * _LANES,
        bytes_accessed=in_bytes + 4,
    )

    out = pl.pallas_call(
        kernel,
        out_shape=jax.ShapeDtypeStruct((1,), jnp.float32),
        grid_spec=pltpu.PrefetchScalarGridSpec(
            num_scalar_prefetch=0,
            grid=(num_tiles,),
            in_specs=[
                pl.BlockSpec((tile_rows, _LANES), lambda i: (i, 0)),
                pl.BlockSpec((tile_rows, _LANES), lambda i: (i, 0)),
            ],
            out_specs=pl.BlockSpec(memory_space=pltpu.MemorySpace.SMEM),
            scratch_shapes=[pltpu.SMEM((2,), jnp.float32)],
        ),
        compiler_params=pltpu.CompilerParams(
            dimension_semantics=("arbitrary",),  # reduction axis
        ),
        cost_estimate=cost,
    )(real2d, fake2d)
    return out[0]


def _reference_loss(pred_real, pred_fake):
    log_real = jnp.maximum(jnp.log(pred_real.astype(jnp.float32)), -100.0)
    log_fake = jnp.maximum(jnp.log(1.0 - pred_fake.astype(jnp.float32)), -100.0)
    err_real = -jnp.mean(log_real)
    err_fake = -jnp.mean(log_fake)
    return 0.5 * (err_fake + err_real)


if __name__ == "__main__":
    key = jax.random.PRNGKey(0)
    k_real, k_fake = jax.random.split(key)

    # Discriminator outputs are probabilities in (0, 1) (BCELoss requires it),
    # so push random logits through a sigmoid. Batch of 32, 1 output each.
    pred_real = jax.nn.sigmoid(jax.random.normal(k_real, (32, 1), dtype=jnp.float32))
    pred_fake = jax.nn.sigmoid(jax.random.normal(k_fake, (32, 1), dtype=jnp.float32))

    loss = discriminator_loss(pred_real, pred_fake)
    jax.block_until_ready(loss)

    ref = _reference_loss(pred_real, pred_fake)
    assert jnp.allclose(loss, ref, rtol=1e-5, atol=1e-5), (loss, ref)

    print("KERNEL_OK")
</pallas_src>

<mosaic_0001>
module attributes {stable_mosaic.version = 11 : i64} {
  func.func @_bce_pair_kernel(%arg0: i32, %arg1: memref<8x128xf32, #tpu.memory_space<vmem>>, %arg2: memref<8x128xf32, #tpu.memory_space<vmem>>, %arg3: memref<1xf32, #tpu.memory_space<smem>>, %arg4: memref<2xf32, #tpu.memory_space<smem>>) attributes {dimension_semantics = [#tpu.dimension_semantics<arbitrary>], iteration_bounds = array<i64: 1>, scalar_prefetch = 0 : i64, scratch_operands = 1 : i64, tpu.core_type = #tpu.core_type<tc>, window_params = [{transform_indices = @transform_0, window_bounds = array<i64: 8, 128>}, {transform_indices = @transform_1, window_bounds = array<i64: 8, 128>}, {transform_indices = @transform_2, window_bounds = array<i64: 1>}]} {
    %c0_i32 = arith.constant 0 : i32
    %0 = arith.cmpi eq, %arg0, %c0_i32 : i32
    %1 = arith.extui %0 : i1 to i32
    %c0_i32_0 = arith.constant 0 : i32
    %2 = arith.cmpi ne, %1, %c0_i32_0 : i32
    scf.if %2 {
      %cst_13 = arith.constant 0.000000e+00 : f32
      %c0_14 = arith.constant 0 : index
      %30 = memref.load %arg4[%c0_14] : memref<2xf32, #tpu.memory_space<smem>>
      memref.store %cst_13, %arg4[%c0_14] : memref<2xf32, #tpu.memory_space<smem>>
      %cst_15 = arith.constant 0.000000e+00 : f32
      %c1_16 = arith.constant 1 : index
      %31 = memref.load %arg4[%c1_16] : memref<2xf32, #tpu.memory_space<smem>>
      memref.store %cst_15, %arg4[%c1_16] : memref<2xf32, #tpu.memory_space<smem>>
    } else {
    }
    %c0 = arith.constant 0 : index
    %c0_1 = arith.constant 0 : index
    %3 = vector.load %arg1[%c0, %c0_1] : memref<8x128xf32, #tpu.memory_space<vmem>>, vector<8x128xf32>
    %c0_2 = arith.constant 0 : index
    %c0_3 = arith.constant 0 : index
    %4 = vector.load %arg2[%c0_2, %c0_3] : memref<8x128xf32, #tpu.memory_space<vmem>>, vector<8x128xf32>
    %5 = math.log %3 : vector<8x128xf32>
    %cst = arith.constant -1.000000e+02 : f32
    %6 = vector.broadcast %cst : f32 to vector<8x128xf32>
    %7 = arith.maximumf %5, %6 : vector<8x128xf32>
    %cst_4 = arith.constant 1.000000e+00 : f32
    %8 = vector.broadcast %cst_4 : f32 to vector<8x128xf32>
    %9 = arith.subf %8, %4 : vector<8x128xf32>
    %10 = math.log %9 : vector<8x128xf32>
    %cst_5 = arith.constant -1.000000e+02 : f32
    %11 = vector.broadcast %cst_5 : f32 to vector<8x128xf32>
    %12 = arith.maximumf %10, %11 : vector<8x128xf32>
    %c0_6 = arith.constant 0 : index
    %13 = memref.load %arg4[%c0_6] : memref<2xf32, #tpu.memory_space<smem>>
    %14 = vector.shape_cast %7 : vector<8x128xf32> to vector<1x8x128xf32>
    %cst_7 = arith.constant dense<0.000000e+00> : vector<1xf32>
    %15 = vector.multi_reduction <add>, %14, %cst_7 [1, 2] : vector<1x8x128xf32> to vector<1xf32>
    %16 = vector.shape_cast %15 : vector<1xf32> to vector<1x1x1xf32>
    %17 = vector.extract %16[0, 0, 0] : f32 from vector<1x1x1xf32>
    %18 = arith.addf %13, %17 : f32
    %c0_8 = arith.constant 0 : index
    %19 = memref.load %arg4[%c0_8] : memref<2xf32, #tpu.memory_space<smem>>
    memref.store %18, %arg4[%c0_8] : memref<2xf32, #tpu.memory_space<smem>>
    %c1 = arith.constant 1 : index
    %20 = memref.load %arg4[%c1] : memref<2xf32, #tpu.memory_space<smem>>
    %21 = vector.shape_cast %12 : vector<8x128xf32> to vector<1x8x128xf32>
    %cst_9 = arith.constant dense<0.000000e+00> : vector<1xf32>
    %22 = vector.multi_reduction <add>, %21, %cst_9 [1, 2] : vector<1x8x128xf32> to vector<1xf32>
    %23 = vector.shape_cast %22 : vector<1xf32> to vector<1x1x1xf32>
    %24 = vector.extract %23[0, 0, 0] : f32 from vector<1x1x1xf32>
    %25 = arith.addf %20, %24 : f32
    %c1_10 = arith.constant 1 : index
    %26 = memref.load %arg4[%c1_10] : memref<2xf32, #tpu.memory_space<smem>>
    memref.store %25, %arg4[%c1_10] : memref<2xf32, #tpu.memory_space<smem>>
    %c0_i32_11 = arith.constant 0 : i32
    %27 = arith.cmpi eq, %arg0, %c0_i32_11 : i32
    %28 = arith.extui %27 : i1 to i32
    %c0_i32_12 = arith.constant 0 : i32
    %29 = arith.cmpi ne, %28, %c0_i32_12 : i32
    scf.if %29 {
      %c0_13 = arith.constant 0 : index
      %30 = memref.load %arg4[%c0_13] : memref<2xf32, #tpu.memory_space<smem>>
      %cst_14 = arith.constant 1.562500e-02 : f32
      %31 = arith.mulf %30, %cst_14 : f32
      %c1_15 = arith.constant 1 : index
      %32 = memref.load %arg4[%c1_15] : memref<2xf32, #tpu.memory_space<smem>>
      %cst_16 = arith.constant 1.562500e-02 : f32
      %33 = arith.mulf %32, %cst_16 : f32
      %34 = arith.addf %31, %33 : f32
      %cst_17 = arith.constant 0.000000e+00 : f32
      %35 = arith.subf %cst_17, %34 : f32
      %c0_18 = arith.constant 0 : index
      %36 = memref.load %arg3[%c0_18] : memref<1xf32, #tpu.memory_space<smem>>
      memref.store %35, %arg3[%c0_18] : memref<1xf32, #tpu.memory_space<smem>>
    } else {
    }
    return
  }
  func.func @transform_0(%arg0: i32) -> (i32, i32) {
    %c0_i32 = arith.constant 0 : i32
    %c0_i32_0 = arith.constant 0 : i32
    return %arg0, %c0_i32 : i32, i32
  }
  func.func @transform_1(%arg0: i32) -> (i32, i32) {
    %c0_i32 = arith.constant 0 : i32
    %c0_i32_0 = arith.constant 0 : i32
    return %arg0, %c0_i32 : i32, i32
  }
  func.func @transform_2(%arg0: i32) -> i32 {
    %c0_i32 = arith.constant 0 : i32
    %c0_i32_0 = arith.constant 0 : i32
    return %c0_i32 : i32
  }
}

</mosaic_0001>

<bundles_post_ra>
// kernel: tpu_custom_call.1
= control target key start
LH: loop header
LB: loop body
LE: loop exit
PB: predicated region body
PF: predicated region fallthrough
CT: control target
= control target key end

     0   :  { %7 = vsyncpa [#allocation4], 0  ;;  %s232_s0 = inlined_call_operand.hbm [shape: f32[8,128], index: 0, kind: input, shape index: {}]   ;;  %s233_s1 = inlined_call_operand.hbm [shape: f32[8,128], index: 1, kind: input, shape index: {}]   ;;  %s234_s2 = inlined_call_operand.hbm [shape: f32[1], index: 2, kind: output, shape index: {}]  }
   0x1   :  { %8 = vsyncpa [#allocation7], 0 }
   0x2   :  { %9 = vsyncpa [#allocation5], 0  ;;  %s178_s9 = smov [#allocation3]   ;;  %s179_s11 = smov [#allocation6]  }
   0x3   :  { %s16_s10 = sshll.u32 %s178_s9, 4  ;;  %s26_s12 = sshll.u32 %s179_s11, 4  ;;  %s17_s10 = int_to_ptr.vmem [resolvable:$true] %s16_s10  ;;  %s27_s12 = int_to_ptr.vmem [resolvable:$true] %s26_s12 }
   0x4   :  { %s118_s15 = scalar_lea.hbm %s232_s0, 128 }
   0x5   :  { %p119_p0 = scmp.ne.s32.totalorder %s232_s0, %s118_s15  ;;  %p122_p1 = scmp.lt.u32.totalorder %s118_s15, %s232_s0 }
   0x7   :  { %p124_p2 = pnand %p122_p1, %p119_p0 }
   0x9   :  { %127 = shalt.err (!%p124_p2)
}
   0xa   :  { %s128_s20 = scalar_lea.vmem %s17_s10, 128  ;;  %p133_p4 = scmp.lt.s32.totalorder %s17_s10, %s17_s10 }
   0xb   :  { %p129_p3 = scmp.ne.s32.totalorder %s17_s10, %s128_s20  ;;  %p134_p5 = scmp.lt.s32.totalorder %s128_s20, %s128_s20 }
   0xd   :  { %p135_p6 = por %p134_p5, %p133_p4 }
   0xf   :  { %p136_p7 = pnand %p135_p6, %p129_p3 }
  0x11   :  { %139 = shalt.err (!%p136_p7)
}
  0x12   :  { %19 = dma.hbm_to_vmem [thread:$0]  %s232_s0, 128, %s17_s10, [#allocation4]  }
  0x13   :  { %s140_s25 = scalar_lea.hbm %s233_s1, 128 }
  0x14   :  { %p141_p8 = scmp.ne.s32.totalorder %s233_s1, %s140_s25  ;;  %p144_p9 = scmp.lt.u32.totalorder %s140_s25, %s233_s1 }
  0x16   :  { %p146_p10 = pnand %p144_p9, %p141_p8 }
  0x18   :  { %149 = shalt.err (!%p146_p10)
}
  0x19   :  { %s150_s30 = scalar_lea.vmem %s27_s12, 128  ;;  %p155_p12 = scmp.lt.s32.totalorder %s27_s12, %s27_s12 }
  0x1a   :  { %p151_p11 = scmp.ne.s32.totalorder %s27_s12, %s150_s30  ;;  %p156_p13 = scmp.lt.s32.totalorder %s150_s30, %s150_s30 }
  0x1c   :  { %p157_p0 = por %p156_p13, %p155_p12 }
  0x1e   :  { %p158_p1 = pnand %p157_p0, %p151_p11 }
  0x20   :  { %161 = shalt.err (!%p158_p1)
}
  0x21   :  { %29 = dma.hbm_to_vmem [thread:$0]  %s233_s1, 128, %s27_s12, [#allocation7]  }
  0x22   :  { %172 = dma.done.wait [#allocation4], 128  }
  0x23   :  { %173 = vsyncadd [#allocation4], 4294967168 }
  0x24   :  { %174 = dma.done.wait [#allocation7], 128  }
  0x25   :  { %175 = vsyncadd [#allocation7], 4294967168  ;;  %v44_v0 = vld [vmem:[#allocation3] sm:$0xff]  ;;  %v45_v1 = vld [vmem:[#allocation6] sm:$0xff]  ;;  %s162_s11 = scalar_lea.hbm %s234_s2, 16 }
  0x26   :  { %114 = vlog2.f32 %v44_v0  ;;  %v49_v2 = vsub.f32 1.0, %v45_v1  ;;  %p163_p2 = scmp.ne.s32.totalorder %s234_s2, %s162_s11  ;;  %p166_p3 = scmp.lt.u32.totalorder %s162_s11, %s234_s2 }
  0x28   :  { %116 = vlog2.f32 %v49_v2  ;;  %p168_p4 = pnand %p166_p3, %p163_p2 }
  0x30   :  { %v115_v3 = vpop.eup %114 }
  0x31   :  { %v47_v4 = vmul.f32 0.6931472, %v115_v3 }
  0x32   :  { %v117_v5 = vpop.eup %116 }
  0x33   :  { %v48_v6 = vmax.f32 %v47_v4, -100.0  ;;  %v51_v7 = vmul.f32 0.6931472, %v117_v5 }
  0x35   :  { %54 = vadd.xlane.f32.xlu0 %v48_v6  ;;  %v52_v8 = vmax.f32 %v51_v7, -100.0 }
  0x39   :  { %67 = vadd.xlane.f32.xlu0 %v52_v8 }
  0xc2   :  { %v55_v9 = vpop.xlane.xlu0 %54 }
  0xc3   :  { %v56_v10 = vrot.slane %v55_v9, 4 }
  0xc5   :  { %v57_v11 = vadd.f32 %v56_v10, %v55_v9 }
  0xc6   :  { %v68_v12 = vpop.xlane.xlu0 %67 }
  0xc7   :  { %v58_v13 = vrot.slane %v57_v11, 2  ;;  %v69_v14 = vrot.slane %v68_v12, 4 }
  0xc9   :  { %v70_v15 = vadd.f32 %v69_v14, %v68_v12  ;;  %v59_v16 = vadd.f32 %v58_v13, %v57_v11 }
  0xcb   :  { %v71_v17 = vrot.slane %v70_v15, 2  ;;  %v60_v18 = vrot.slane %v59_v16, 1 }
  0xcd   :  { %v72_v19 = vadd.f32 %v71_v17, %v70_v15  ;;  %v61_v20 = vadd.f32 %v60_v18, %v59_v16 }
  0xcf   :  { %107 = vpush %v61_v20  ;;  %v73_v21 = vrot.slane %v72_v19, 1 }
  0xd1   :  { %v74_v22 = vadd.f32 %v73_v21, %v72_v19 }
  0xd3   :  { %109 = vpush %v74_v22 }
 0x100   :  { %s108_s1 = spop %107 }
 0x101   :  { %s83_s4 = smul.f32 0.015625, %s108_s1 }
 0x104   :  { %s110_s5 = spop %109 }
 0x105   :  { %s85_s6 = smul.f32 0.015625, %s110_s5 }
 0x107   :  { %s86_s7 = sadd.f32 %s85_s6, %s83_s4 }
 0x109   :  { %s87_s8 = ssub.f32 0.0, %s86_s7 }
 0x10b   :  { %89 = sst [smem:[#allocation8]] %s87_s8 }
 0x10c   :  { %171 = shalt.err (!%p168_p4)
}
 0x10d   :  { %s180_s16 = smov [#allocation8]  }
 0x10e   :  { %97 = dma.smem_to_hbm %s180_s16, 16, %s234_s2, [#allocation5]  }
 0x10f   :  { %176 = dma.done.wait [#allocation5], 16  }
 0x110   :  { %177 = vsyncadd [#allocation5], 4294967280 }
 0x111   :  { %101 = sfence }
 0x112   :  { %102 = vsyncpa [#allocation4], 1 }
 0x113   :  { %103 = vsyncpa [#allocation7], 1 }
 0x114   :  { %104 = vsyncpa [#allocation5], 1 }

</bundles_post_ra>
